<compile_context>
chip_gen: v5e
topology: v5e:2x2
jax: 0.10.0
libtpu: 0.0.40
codegen_flags: <defaults>
</compile_context>

<pallas_src>
import math
import numpy as np
import jax
import jax.numpy as jnp
from jax import lax
from jax.experimental import pallas as pl
from jax.experimental.pallas import tpu as pltpu

# ----- small synthetic sizes consistent with the module's forward -----
VOCAB = 64            # rows of token_weights (decoder vocab)
H = 32                # hidden size (token_weights.shape[1] == self.h)
NUM_HEADS = 4         # fixed in TypeTokenBertET.__init__
PER_HEAD = H // NUM_HEADS
N_TYPES = 8           # number of entity types
TYPE_LEN = 8          # padded type-token sequence length (== max type seq len)
BATCH = 2
SEQ = 8
LN_EPS = 1e-5
NEG_INF = -1e15       # masked_fill value used in MultiHeadAttentionDirect

NT = N_TYPES * TYPE_LEN            # 64 type-token rows
BS = BATCH * SEQ                   # 16 input-token rows
NI = NT + BS                       # 80 rows gathered in the fused one-hot matmul
IDX_ROWS = 96                      # index slab rows (sublane-aligned sections, padded)
SEQLEN_OFF = NT + BS               # 80  (multiple of 8)
MIDX_OFF = SEQLEN_OFF + N_TYPES    # 88  (multiple of 8)
OUT_LANES = 128                    # single lane-dense packed output width


# ============================ fused Pallas kernel ============================

def _fused_kernel(idx_ref, vec_ref, wmat_ref, tw_ref, out_ref):
    f32 = jnp.float32

    tw = tw_ref[...]                                   # [VOCAB, H]

    # ---- packed small operands ([8, H] slab): one DMA instead of 7 padded (1,H) tiles ----
    bk    = vec_ref[0:1, :]
    bv    = vec_ref[1:2, :]
    qu    = vec_ref[2:3, :]                            # type_attn_embed + u (flattened per head)
    bff   = vec_ref[3:4, :]
    gamma = vec_ref[4:5, :]
    beta  = vec_ref[5:6, :]
    b_enc = vec_ref[6:7, :]

    # ---- packed weight slab ([5H, H]); static row slices are free ----
    wk_t   = wmat_ref[0 * H:1 * H, :]
    wv_t   = wmat_ref[1 * H:2 * H, :]
    wff_t  = wmat_ref[2 * H:3 * H, :]
    wenc_t = wmat_ref[3 * H:4 * H, :]
    hproj  = wmat_ref[4 * H:5 * H, :]                  # block-diag per-head sum + broadcast-back

    # ---- ONE fused one-hot gather: type-token vecs + input-token embeddings ----
    ids = idx_ref[0:NI, :]                                              # (80,1) int32
    oh = (lax.broadcasted_iota(jnp.int32, (NI, VOCAB), 1) == ids).astype(f32)
    gathered = jnp.dot(oh, tw, preferred_element_type=f32)              # (80, H)
    vecs = gathered[0:NT, :]                                            # (64, H) type tokens
    emb = gathered[NT:NI, :]                                            # (16, H) input tokens

    # ---- MultiHeadAttentionDirect over all N_TYPES in one shot ----
    k = jnp.dot(vecs, wk_t, preferred_element_type=f32) + bk            # [NT, H]
    v = jnp.dot(vecs, wv_t, preferred_element_type=f32) + bv            # [NT, H]

    # per-head (q + u) . k, replicated across each head's lanes, one full-width matmul
    scores = jnp.dot(k * qu, hproj, preferred_element_type=f32)         # [NT, H]
    scores = scores * (1.0 / math.sqrt(PER_HEAD))                       # scaled=True

    # key-padding mask rebuilt in-kernel from the 8 seq lens (no extra input)
    seq_lens = idx_ref[SEQLEN_OFF:SEQLEN_OFF + N_TYPES, :]              # (8,1) int32
    mask3 = (lax.broadcasted_iota(jnp.int32, (N_TYPES, TYPE_LEN, 1), 1)
             < seq_lens.reshape(N_TYPES, 1, 1))                         # (8,8,1) bool

    # segmented softmax over keys: one (TYPE_LEN x H) sublane tile per type
    s3 = scores.reshape(N_TYPES, TYPE_LEN, H)
    s3 = jnp.where(mask3, s3, NEG_INF)
    m = jnp.max(s3, axis=1, keepdims=True)
    p = jnp.exp(s3 - m)
    denom = jnp.sum(p, axis=1, keepdims=True)
    attn = p / denom                                                    # exact reciprocal

    v3 = v.reshape(N_TYPES, TYPE_LEN, H)
    res = jnp.sum(attn * v3, axis=1)                                    # [N_TYPES, H] head-wise wsum
    res = jnp.dot(res, wff_t, preferred_element_type=f32) + bff         # ff_final

    # Layer_Process('an'): output = inp + inp, then LayerNorm (eval => dropout identity)
    y = res + res
    mu = jnp.mean(y, axis=-1, keepdims=True)
    var = jnp.mean((y - mu) * (y - mu), axis=-1, keepdims=True)
    th = (y - mu) * lax.rsqrt(var + LN_EPS) * gamma + beta              # [N_TYPES, H]

    # ---- encoder stand-in + tied-weight MLM decoder ----
    # TODO(synk): BertForMaskedLMHidden / BertOnlyMLMHead are an external pretrained BERT
    # encoder+head not defined in this module; replaced by a deterministic tanh(Linear)
    # stand-in with a tied-weight (token_weights) decoder.
    hidden = jnp.tanh(jnp.dot(emb, wenc_t, preferred_element_type=f32) + b_enc)   # [BS, H]
    mlm = lax.dot_general(hidden, tw, (((1,), (1,)), ((), ())),
                          preferred_element_type=f32)                   # [BS, VOCAB]

    # ---- gather rows at mask_idxs (one-hot selection) and final type logits ----
    midx = idx_ref[MIDX_OFF:MIDX_OFF + BATCH, :]                        # (2,1) int32
    pos = lax.broadcasted_iota(jnp.int32, (BATCH, BS), 1)
    row = lax.broadcasted_iota(jnp.int32, (BATCH, BS), 0)
    sel = (pos == row * SEQ + midx).astype(f32)                         # [BATCH, BS]
    hvec = jnp.dot(sel, hidden, preferred_element_type=f32)             # [BATCH, H]
    logits = lax.dot_general(hvec, th, (((1,), (1,)), ((), ())),
                             preferred_element_type=f32)                # [BATCH, N_TYPES]

    # ---- ONE lane-dense packed output block (16,128): mlm | th | logits | pad ----
    th_pad = jnp.concatenate([th, jnp.zeros((BS - N_TYPES, H), f32)], axis=0)          # (16,32)
    log_pad = jnp.concatenate([logits, jnp.zeros((BS - BATCH, N_TYPES), f32)], axis=0)  # (16,8)
    tail = jnp.zeros((BS, OUT_LANES - VOCAB - H - N_TYPES), f32)                        # (16,24)
    out_ref[...] = jnp.concatenate([mlm, th_pad, log_pad, tail], axis=1)                # (16,128)


# ============================ one-time parameter packing ============================

def prepare_params(params):
    """Input-invariant packing (hoisted out of the per-call forward)."""
    qu = params["type_attn_embed"].reshape(1, H) + params["u"].reshape(1, H)
    vec_slab = jnp.concatenate([
        params["bk"].reshape(1, H), params["bv"].reshape(1, H), qu,
        params["bff"].reshape(1, H), params["ln_gamma"].reshape(1, H),
        params["ln_beta"].reshape(1, H), params["b_enc"].reshape(1, H),
        jnp.zeros((1, H), jnp.float32)], axis=0)                        # [8, H]
    head_proj = (jnp.arange(H)[:, None] // PER_HEAD
                 == jnp.arange(H)[None, :] // PER_HEAD).astype(jnp.float32)   # [H, H]
    wmat_slab = jnp.concatenate([params["wk"].T, params["wv"].T,
                                 params["wff"].T, params["w_enc"].T,
                                 head_proj], axis=0)                    # [5H, H]
    return {"vec_slab": vec_slab, "wmat_slab": wmat_slab,
            "token_weights": params["token_weights"]}


# ============================ wrapper ============================

@jax.jit
def type_token_bert_et_forward(packed, input_ids, attn_mask, mask_idxs,
                               type_token_ids, type_seq_lens):
    """mode='tt' forward of TypeTokenBertET in a single fused pallas_call.

    Returns (logits, mlm_logits, type_hiddens); the PyTorch module returns (logits, mlm_logits)
    and stores type_hiddens as an attribute.  attn_mask is unused by the encoder stand-in.
    """
    del attn_mask

    # ----- per-call prep: one int32 index slab (sublane-aligned sections) -----
    idx_flat = jnp.concatenate([
        type_token_ids.astype(jnp.int32).reshape(-1),        # rows  0..63
        input_ids.astype(jnp.int32).reshape(-1),              # rows 64..79
        type_seq_lens.astype(jnp.int32).reshape(-1),          # rows 80..87
        mask_idxs.astype(jnp.int32).reshape(-1),               # rows 88..89
        jnp.zeros((IDX_ROWS - NT - BS - N_TYPES - BATCH,), jnp.int32)], axis=0)
    idx_slab = idx_flat.reshape(IDX_ROWS, 1)

    vspec = pl.BlockSpec(memory_space=pltpu.MemorySpace.VMEM)
    out = pl.pallas_call(
        _fused_kernel,
        out_shape=jax.ShapeDtypeStruct((BS, OUT_LANES), jnp.float32),
        in_specs=[vspec] * 4,
        out_specs=vspec,
    )(idx_slab, packed["vec_slab"], packed["wmat_slab"], packed["token_weights"])

    # slice the lane-dense packed output apart
    mlm_logits = out[:, 0:VOCAB].reshape(BATCH, SEQ, VOCAB)
    th = out[0:N_TYPES, VOCAB:VOCAB + H]
    logits = out[0:BATCH, VOCAB + H:VOCAB + H + N_TYPES]
    return logits, mlm_logits, th


# ============================ reference (plain JAX) ============================

def type_attention_ref(vecs, seq_lens, p):
    k = vecs @ p["wk"].T + p["bk"]
    v = vecs @ p["wv"].T + p["bv"]
    k_h = k.reshape(N_TYPES, TYPE_LEN, NUM_HEADS, PER_HEAD).transpose(0, 2, 1, 3)
    v_h = v.reshape(N_TYPES, TYPE_LEN, NUM_HEADS, PER_HEAD).transpose(0, 2, 1, 3)
    q = p["type_attn_embed"].reshape(1, 1, NUM_HEADS, PER_HEAD).transpose(0, 2, 1, 3)
    qu = q + p["u"][None, :, None, :]
    scores = jnp.einsum("xhqd,nhtd->nhqt", qu, k_h) / math.sqrt(PER_HEAD)
    mask = jnp.arange(TYPE_LEN)[None, :] < seq_lens[:, None]
    scores = jnp.where(mask[:, None, None, :], scores, NEG_INF)
    attn = jax.nn.softmax(scores, axis=-1)
    out = jnp.einsum("nhqt,nhtd->nhqd", attn, v_h)
    out = out.transpose(0, 2, 1, 3).reshape(N_TYPES, H)
    out = out @ p["wff"].T + p["bff"]
    y = out + out
    mu = y.mean(-1, keepdims=True)
    var = ((y - mu) ** 2).mean(-1, keepdims=True)
    return (y - mu) / jnp.sqrt(var + LN_EPS) * p["ln_gamma"] + p["ln_beta"]


def forward_ref(params, input_ids, mask_idxs, type_token_ids, type_seq_lens):
    tw = params["token_weights"]
    vecs = tw[type_token_ids.reshape(-1)].reshape(N_TYPES, TYPE_LEN, H)
    th = type_attention_ref(vecs, type_seq_lens, params)
    emb = tw[input_ids.reshape(-1)]
    hidden = jnp.tanh(emb @ params["w_enc"].T + params["b_enc"])
    mlm_logits = (hidden @ tw.T).reshape(BATCH, SEQ, VOCAB)
    hidden_all = hidden.reshape(BATCH, SEQ, H)
    hvec = hidden_all[jnp.arange(BATCH), mask_idxs, :]
    logits = hvec @ th.T
    return logits, mlm_logits, th


# ============================ parameter init ============================

def init_params(key):
    ks = jax.random.split(key, 12)
    return {
        "token_weights": 0.1 * jax.random.normal(ks[0], (VOCAB, H), jnp.float32),
        "wk": 0.05 * jax.random.normal(ks[1], (H, H), jnp.float32),
        "bk": 0.01 * jax.random.normal(ks[2], (H,), jnp.float32),
        "wv": 0.05 * jax.random.normal(ks[3], (H, H), jnp.float32),
        "bv": 0.01 * jax.random.normal(ks[4], (H,), jnp.float32),
        "wff": 0.05 * jax.random.normal(ks[5], (H, H), jnp.float32),
        "bff": 0.01 * jax.random.normal(ks[6], (H,), jnp.float32),
        "u": jnp.zeros((NUM_HEADS, PER_HEAD), jnp.float32),   # nn.Parameter(torch.zeros(...))
        "ln_gamma": jnp.ones((H,), jnp.float32),
        "ln_beta": jnp.zeros((H,), jnp.float32),
        "type_attn_embed": 0.1 * jax.random.normal(ks[7], (1, H), jnp.float32),
        # deterministic encoder stand-in (see TODO(synk) in the kernel)
        "w_enc": 0.05 * jax.random.normal(ks[8], (H, H), jnp.float32),
        "b_enc": 0.01 * jax.random.normal(ks[9], (H,), jnp.float32),
    }


if __name__ == "__main__":
    key = jax.random.PRNGKey(0)
    kp, k1, k2, k3 = jax.random.split(key, 4)
    params = init_params(kp)

    input_ids = jax.random.randint(k1, (BATCH, SEQ), 0, VOCAB, dtype=jnp.int32)
    attn_mask = jnp.ones((BATCH, SEQ), jnp.int32)          # unused by the encoder stand-in
    mask_idxs = jnp.array([2, 5], dtype=jnp.int32)
    type_token_ids = jax.random.randint(k2, (N_TYPES, TYPE_LEN), 0, VOCAB, dtype=jnp.int32)
    type_seq_lens = jax.random.randint(k3, (N_TYPES,), 1, TYPE_LEN + 1, dtype=jnp.int32)
    # as in the module, the padded width equals the max type-token seq length
    type_seq_lens = type_seq_lens.at[0].set(TYPE_LEN)

    # one-time, input-invariant parameter packing (hoisted out of the jitted forward)
    packed = prepare_params(params)
    jax.block_until_ready(packed)

    logits, mlm_logits, type_hiddens = type_token_bert_et_forward(
        packed, input_ids, attn_mask, mask_idxs, type_token_ids, type_seq_lens)
    jax.block_until_ready((logits, mlm_logits, type_hiddens))

    assert logits.shape == (BATCH, N_TYPES)
    assert mlm_logits.shape == (BATCH, SEQ, VOCAB)
    assert type_hiddens.shape == (N_TYPES, H)

    # numerics sanity check of the fused Pallas kernel against a plain-JAX reference
    ref_logits, ref_mlm, ref_th = forward_ref(
        params, input_ids, mask_idxs, type_token_ids, type_seq_lens)
    assert np.allclose(np.asarray(type_hiddens), np.asarray(ref_th),
                       atol=1e-2, rtol=1e-2), "type attention mismatch"
    assert np.allclose(np.asarray(mlm_logits), np.asarray(ref_mlm),
                       atol=1e-2, rtol=1e-2), "mlm logits mismatch"
    assert np.allclose(np.asarray(logits), np.asarray(ref_logits),
                       atol=1e-2, rtol=1e-2), "type logits mismatch"

    print("KERNEL_OK")
</pallas_src>

<mosaic_0001>
module attributes {stable_mosaic.version = 11 : i64} {
  func.func @_fused_kernel(%arg0: memref<96x1xi32, #tpu.memory_space<vmem>>, %arg1: memref<8x32xf32, #tpu.memory_space<vmem>>, %arg2: memref<160x32xf32, #tpu.memory_space<vmem>>, %arg3: memref<64x32xf32, #tpu.memory_space<vmem>>, %arg4: memref<16x128xf32, #tpu.memory_space<vmem>>) attributes {dimension_semantics = [], scalar_prefetch = 0 : i64, scratch_operands = 0 : i64, tpu.core_type = #tpu.core_type<tc>} {
    %c0 = arith.constant 0 : index
    %c0_0 = arith.constant 0 : index
    %0 = vector.load %arg3[%c0, %c0_0] : memref<64x32xf32, #tpu.memory_space<vmem>>, vector<64x32xf32>
    %c0_1 = arith.constant 0 : index
    %c0_2 = arith.constant 0 : index
    %1 = vector.load %arg1[%c0_1, %c0_2] : memref<8x32xf32, #tpu.memory_space<vmem>>, vector<1x32xf32>
    %c1 = arith.constant 1 : index
    %c0_3 = arith.constant 0 : index
    %2 = vector.load %arg1[%c1, %c0_3] : memref<8x32xf32, #tpu.memory_space<vmem>>, vector<1x32xf32>
    %c2 = arith.constant 2 : index
    %c0_4 = arith.constant 0 : index
    %3 = vector.load %arg1[%c2, %c0_4] : memref<8x32xf32, #tpu.memory_space<vmem>>, vector<1x32xf32>
    %c3 = arith.constant 3 : index
    %c0_5 = arith.constant 0 : index
    %4 = vector.load %arg1[%c3, %c0_5] : memref<8x32xf32, #tpu.memory_space<vmem>>, vector<1x32xf32>
    %c4 = arith.constant 4 : index
    %c0_6 = arith.constant 0 : index
    %5 = vector.load %arg1[%c4, %c0_6] : memref<8x32xf32, #tpu.memory_space<vmem>>, vector<1x32xf32>
    %c5 = arith.constant 5 : index
    %c0_7 = arith.constant 0 : index
    %6 = vector.load %arg1[%c5, %c0_7] : memref<8x32xf32, #tpu.memory_space<vmem>>, vector<1x32xf32>
    %c6 = arith.constant 6 : index
    %c0_8 = arith.constant 0 : index
    %7 = vector.load %arg1[%c6, %c0_8] : memref<8x32xf32, #tpu.memory_space<vmem>>, vector<1x32xf32>
    %c0_9 = arith.constant 0 : index
    %c0_10 = arith.constant 0 : index
    %8 = vector.load %arg2[%c0_9, %c0_10] : memref<160x32xf32, #tpu.memory_space<vmem>>, vector<32x32xf32>
    %c32 = arith.constant 32 : index
    %c0_11 = arith.constant 0 : index
    %9 = vector.load %arg2[%c32, %c0_11] : memref<160x32xf32, #tpu.memory_space<vmem>>, vector<32x32xf32>
    %c64 = arith.constant 64 : index
    %c0_12 = arith.constant 0 : index
    %10 = vector.load %arg2[%c64, %c0_12] : memref<160x32xf32, #tpu.memory_space<vmem>>, vector<32x32xf32>
    %c96 = arith.constant 96 : index
    %c0_13 = arith.constant 0 : index
    %11 = vector.load %arg2[%c96, %c0_13] : memref<160x32xf32, #tpu.memory_space<vmem>>, vector<32x32xf32>
    %c128 = arith.constant 128 : index
    %c0_14 = arith.constant 0 : index
    %12 = vector.load %arg2[%c128, %c0_14] : memref<160x32xf32, #tpu.memory_space<vmem>>, vector<32x32xf32>
    %c0_15 = arith.constant 0 : index
    %c0_16 = arith.constant 0 : index
    %13 = vector.load %arg0[%c0_15, %c0_16] : memref<96x1xi32, #tpu.memory_space<vmem>>, vector<80x1xi32>
    %14 = tpu.iota {dimensions = array<i32: 1>} : vector<80x64xi32>
    %15 = vector.broadcast %13 : vector<80x1xi32> to vector<80x64xi32>
    %16 = arith.cmpi eq, %14, %15 : vector<80x64xi32>
    %17 = arith.extui %16 : vector<80x64xi1> to vector<80x64xi32>
    %18 = arith.sitofp %17 : vector<80x64xi32> to vector<80x64xf32>
    %cst = arith.constant dense<0.000000e+00> : vector<80x32xf32>
    %19 = tpu.matmul %18, %0, %cst {dimension_numbers = #tpu.dot_dimension_numbers<[1], [0], [0], [1], [0, 0, 1, 1], [], []>} : vector<80x64xf32>, vector<64x32xf32>, vector<80x32xf32> -> vector<80x32xf32>
    %20 = vector.extract_strided_slice %19 {offsets = [0, 0], sizes = [64, 32], strides = [1, 1]} : vector<80x32xf32> to vector<64x32xf32>
    %21 = vector.extract_strided_slice %19 {offsets = [64, 0], sizes = [16, 32], strides = [1, 1]} : vector<80x32xf32> to vector<16x32xf32>
    %cst_17 = arith.constant dense<0.000000e+00> : vector<64x32xf32>
    %22 = tpu.matmul %20, %8, %cst_17 {dimension_numbers = #tpu.dot_dimension_numbers<[1], [0], [0], [1], [0, 0, 1, 1], [], []>} : vector<64x32xf32>, vector<32x32xf32>, vector<64x32xf32> -> vector<64x32xf32>
    %23 = vector.broadcast %1 : vector<1x32xf32> to vector<64x32xf32>
    %24 = arith.addf %22, %23 : vector<64x32xf32>
    %cst_18 = arith.constant dense<0.000000e+00> : vector<64x32xf32>
    %25 = tpu.matmul %20, %9, %cst_18 {dimension_numbers = #tpu.dot_dimension_numbers<[1], [0], [0], [1], [0, 0, 1, 1], [], []>} : vector<64x32xf32>, vector<32x32xf32>, vector<64x32xf32> -> vector<64x32xf32>
    %26 = vector.broadcast %2 : vector<1x32xf32> to vector<64x32xf32>
    %27 = arith.addf %25, %26 : vector<64x32xf32>
    %28 = vector.broadcast %3 : vector<1x32xf32> to vector<64x32xf32>
    %29 = arith.mulf %24, %28 : vector<64x32xf32>
    %cst_19 = arith.constant dense<0.000000e+00> : vector<64x32xf32>
    %30 = tpu.matmul %29, %12, %cst_19 {dimension_numbers = #tpu.dot_dimension_numbers<[1], [0], [0], [1], [0, 0, 1, 1], [], []>} : vector<64x32xf32>, vector<32x32xf32>, vector<64x32xf32> -> vector<64x32xf32>
    %cst_20 = arith.constant 0.353553385 : f32
    %31 = vector.broadcast %cst_20 : f32 to vector<64x32xf32>
    %32 = arith.mulf %30, %31 : vector<64x32xf32>
    %c80 = arith.constant 80 : index
    %c0_21 = arith.constant 0 : index
    %33 = vector.load %arg0[%c80, %c0_21] : memref<96x1xi32, #tpu.memory_space<vmem>>, vector<8x1xi32>
    %34 = tpu.iota {dimensions = array<i32: 1>} : vector<8x8x1xi32>
    %35 = vector.shape_cast %33 : vector<8x1xi32> to vector<8x1x1xi32>
    %36 = vector.broadcast %35 : vector<8x1x1xi32> to vector<8x8x1xi32>
    %37 = arith.cmpi slt, %34, %36 : vector<8x8x1xi32>
    %38 = vector.shape_cast %32 : vector<64x32xf32> to vector<8x8x32xf32>
    %cst_22 = arith.constant -9.99999986E+14 : f32
    %39 = vector.shape_cast %37 : vector<8x8x1xi1> to vector<8x8x1xi1>
    %40 = vector.broadcast %39 : vector<8x8x1xi1> to vector<8x8x32xi1>
    %41 = vector.broadcast %cst_22 : f32 to vector<8x8x32xf32>
    %42 = arith.select %40, %38, %41 : vector<8x8x32xi1>, vector<8x8x32xf32>
    %cst_23 = arith.constant dense<0xFF800000> : vector<8x32xf32>
    %43 = vector.multi_reduction <maximumf>, %42, %cst_23 [1] : vector<8x8x32xf32> to vector<8x32xf32>
    %44 = vector.shape_cast %43 : vector<8x32xf32> to vector<8x1x32xf32>
    %45 = vector.broadcast %44 : vector<8x1x32xf32> to vector<8x8x32xf32>
    %46 = arith.subf %42, %45 : vector<8x8x32xf32>
    %47 = math.exp %46 : vector<8x8x32xf32>
    %cst_24 = arith.constant dense<0.000000e+00> : vector<8x32xf32>
    %48 = vector.multi_reduction <add>, %47, %cst_24 [1] : vector<8x8x32xf32> to vector<8x32xf32>
    %49 = vector.shape_cast %48 : vector<8x32xf32> to vector<8x1x32xf32>
    %50 = vector.broadcast %49 : vector<8x1x32xf32> to vector<8x8x32xf32>
    %51 = arith.divf %47, %50 : vector<8x8x32xf32>
    %52 = vector.shape_cast %27 : vector<64x32xf32> to vector<8x8x32xf32>
    %53 = arith.mulf %51, %52 : vector<8x8x32xf32>
    %cst_25 = arith.constant dense<0.000000e+00> : vector<8x32xf32>
    %54 = vector.multi_reduction <add>, %53, %cst_25 [1] : vector<8x8x32xf32> to vector<8x32xf32>
    %cst_26 = arith.constant dense<0.000000e+00> : vector<8x32xf32>
    %55 = tpu.matmul %54, %10, %cst_26 {dimension_numbers = #tpu.dot_dimension_numbers<[1], [0], [0], [1], [0, 0, 1, 1], [], []>} : vector<8x32xf32>, vector<32x32xf32>, vector<8x32xf32> -> vector<8x32xf32>
    %56 = vector.broadcast %4 : vector<1x32xf32> to vector<8x32xf32>
    %57 = arith.addf %55, %56 : vector<8x32xf32>
    %58 = arith.addf %57, %57 : vector<8x32xf32>
    %cst_27 = arith.constant dense<0.000000e+00> : vector<8xf32>
    %59 = vector.multi_reduction <add>, %58, %cst_27 [1] : vector<8x32xf32> to vector<8xf32>
    %60 = vector.shape_cast %59 : vector<8xf32> to vector<8x1xf32>
    %cst_28 = arith.constant 3.200000e+01 : f32
    %61 = vector.broadcast %cst_28 : f32 to vector<8x1xf32>
    %62 = arith.divf %60, %61 : vector<8x1xf32>
    %63 = vector.broadcast %62 : vector<8x1xf32> to vector<8x32xf32>
    %64 = arith.subf %58, %63 : vector<8x32xf32>
    %65 = vector.broadcast %62 : vector<8x1xf32> to vector<8x32xf32>
    %66 = arith.subf %58, %65 : vector<8x32xf32>
    %67 = arith.mulf %64, %66 : vector<8x32xf32>
    %cst_29 = arith.constant dense<0.000000e+00> : vector<8xf32>
    %68 = vector.multi_reduction <add>, %67, %cst_29 [1] : vector<8x32xf32> to vector<8xf32>
    %69 = vector.shape_cast %68 : vector<8xf32> to vector<8x1xf32>
    %cst_30 = arith.constant 3.200000e+01 : f32
    %70 = vector.broadcast %cst_30 : f32 to vector<8x1xf32>
    %71 = arith.divf %69, %70 : vector<8x1xf32>
    %72 = vector.broadcast %62 : vector<8x1xf32> to vector<8x32xf32>
    %73 = arith.subf %58, %72 : vector<8x32xf32>
    %cst_31 = arith.constant 9.99999974E-6 : f32
    %74 = vector.broadcast %cst_31 : f32 to vector<8x1xf32>
    %75 = arith.addf %71, %74 : vector<8x1xf32>
    %76 = math.rsqrt %75 : vector<8x1xf32>
    %77 = vector.broadcast %76 : vector<8x1xf32> to vector<8x32xf32>
    %78 = arith.mulf %73, %77 : vector<8x32xf32>
    %79 = vector.broadcast %5 : vector<1x32xf32> to vector<8x32xf32>
    %80 = arith.mulf %78, %79 : vector<8x32xf32>
    %81 = vector.broadcast %6 : vector<1x32xf32> to vector<8x32xf32>
    %82 = arith.addf %80, %81 : vector<8x32xf32>
    %cst_32 = arith.constant dense<0.000000e+00> : vector<16x32xf32>
    %83 = tpu.matmul %21, %11, %cst_32 {dimension_numbers = #tpu.dot_dimension_numbers<[1], [0], [0], [1], [0, 0, 1, 1], [], []>} : vector<16x32xf32>, vector<32x32xf32>, vector<16x32xf32> -> vector<16x32xf32>
    %84 = vector.broadcast %7 : vector<1x32xf32> to vector<16x32xf32>
    %85 = arith.addf %83, %84 : vector<16x32xf32>
    %86 = math.tanh %85 : vector<16x32xf32>
    %cst_33 = arith.constant dense<0.000000e+00> : vector<16x64xf32>
    %87 = tpu.matmul %86, %0, %cst_33 {dimension_numbers = #tpu.dot_dimension_numbers<[1], [1], [0], [0], [0, 0, 1, 0], [], []>} : vector<16x32xf32>, vector<64x32xf32>, vector<16x64xf32> -> vector<16x64xf32>
    %c88 = arith.constant 88 : index
    %c0_34 = arith.constant 0 : index
    %88 = vector.load %arg0[%c88, %c0_34] : memref<96x1xi32, #tpu.memory_space<vmem>>, vector<2x1xi32>
    %89 = tpu.iota {dimensions = array<i32: 1>} : vector<2x16xi32>
    %90 = tpu.iota {dimensions = array<i32: 0>} : vector<2x16xi32>
    %c8_i32 = arith.constant 8 : i32
    %91 = vector.broadcast %c8_i32 : i32 to vector<2x16xi32>
    %92 = arith.muli %90, %91 : vector<2x16xi32>
    %93 = vector.broadcast %88 : vector<2x1xi32> to vector<2x16xi32>
    %94 = arith.addi %92, %93 : vector<2x16xi32>
    %95 = arith.cmpi eq, %89, %94 : vector<2x16xi32>
    %96 = arith.extui %95 : vector<2x16xi1> to vector<2x16xi32>
    %97 = arith.sitofp %96 : vector<2x16xi32> to vector<2x16xf32>
    %cst_35 = arith.constant dense<0.000000e+00> : vector<2x32xf32>
    %98 = tpu.matmul %97, %86, %cst_35 {dimension_numbers = #tpu.dot_dimension_numbers<[1], [0], [0], [1], [0, 0, 1, 1], [], []>} : vector<2x16xf32>, vector<16x32xf32>, vector<2x32xf32> -> vector<2x32xf32>
    %cst_36 = arith.constant dense<0.000000e+00> : vector<2x8xf32>
    %99 = tpu.matmul %98, %82, %cst_36 {dimension_numbers = #tpu.dot_dimension_numbers<[1], [1], [0], [0], [0, 0, 1, 0], [], []>} : vector<2x32xf32>, vector<8x32xf32>, vector<2x8xf32> -> vector<2x8xf32>
    %cst_37 = arith.constant 0.000000e+00 : f32
    %100 = vector.broadcast %cst_37 : f32 to vector<8x32xf32>
    %101 = tpu.concatenate %82, %100 in 0 : vector<8x32xf32>, vector<8x32xf32> -> vector<16x32xf32>
    %cst_38 = arith.constant 0.000000e+00 : f32
    %102 = vector.broadcast %cst_38 : f32 to vector<14x8xf32>
    %103 = tpu.concatenate %99, %102 in 0 : vector<2x8xf32>, vector<14x8xf32> -> vector<16x8xf32>
    %cst_39 = arith.constant 0.000000e+00 : f32
    %104 = vector.broadcast %cst_39 : f32 to vector<16x24xf32>
    %105 = tpu.concatenate %87, %101, %103, %104 in 1 : vector<16x64xf32>, vector<16x32xf32>, vector<16x8xf32>, vector<16x24xf32> -> vector<16x128xf32>
    %c0_40 = arith.constant 0 : index
    %c0_41 = arith.constant 0 : index
    %106 = vector.load %arg4[%c0_40, %c0_41] : memref<16x128xf32, #tpu.memory_space<vmem>>, vector<16x128xf32>
    tpu.vector_store %arg4[%c0_40, %c0_41], %105 {strides = array<i32>} : memref<16x128xf32, #tpu.memory_space<vmem>>, vector<16x128xf32>,
    return
  }
}

</mosaic_0001>

<bundles_post_ra>
// kernel: type_token_bert_et_forward.1
= control target key start
LH: loop header
LB: loop body
LE: loop exit
PB: predicated region body
PF: predicated region fallthrough
CT: control target
= control target key end

     0   :  { %v1156_v0 = vmov 0   ;;  %v62_v7 = vlaneseq  ;;  %vm124_vm8 = vcmask 523264   ;;  %v1157_v48 = vmov 0.0   ;;  %s1158_s26 = smov 64   ;;  %s1160_s27 = smov 96   ;;  %s1625_s0 = inlined_call_operand.vmem [shape: s32[96,1], index: 0, kind: input, shape index: {}]   ;;  %s1626_s3 = inlined_call_operand.vmem [shape: f32[64,32], index: 3, kind: input, shape index: {}]   ;;  %s1627_s2 = inlined_call_operand.vmem [shape: f32[160,32], index: 2, kind: input, shape index: {}]   ;;  %s1628_s1 = inlined_call_operand.vmem [shape: f32[8,32], index: 1, kind: input, shape index: {}]   ;;  %s1629_s4 = inlined_call_operand.vmem [shape: f32[16,128], index: 4, kind: output, shape index: {}]  }
   0x1   :  { %1107 = vset.pattern.permute.xlu1 %v1156_v0  ;;  %1106 = vset.pattern.permute.xlu0 %v1156_v0  ;;  %v54_v1 = vld [vmem:[%s1625_s0 + $0x10] sm:$0xff]  ;;  %v52_v2 = vld [vmem:[%s1625_s0] sm:$0xff]  ;;  %v55_v4 = vld [vmem:[%s1625_s0 + $0x18] sm:$0xff] }
   0x2   :  { %71 = vperm.xlu1 %1107, %v54_v1   ;;  %65 = vperm.xlu0 %1106, %v52_v2   ;;  %v56_v3 = vld [vmem:[%s1625_s0 + $0x20] sm:$0xff]  ;;  %v53_v5 = vld [vmem:[%s1625_s0 + $0x8] sm:$0xff]  ;;  %v393_v8 = vld [vmem:[%s1625_s0 + $0x50] sm:$0xff]  ;;  %v1217_v12 = vshrl.u32 %v62_v7, 7  ;;  %v1293_v46 = vand.u32 127, %v62_v7 }
   0x3   :  { %1108 = vset.pattern.permute.xlu2 %v1156_v0  ;;  %v57_v6 = vld [vmem:[%s1625_s0 + $0x28] sm:$0xff]  ;;  %v396_v9 = vrot.slane %v393_v8, 1  ;;  %v59_v10 = vld [vmem:[%s1625_s0 + $0x38] sm:$0xff]  ;;  %v58_v11 = vld [vmem:[%s1625_s0 + $0x30] sm:$0xff]  ;;  %v403_v13 = vperm.slane %v393_v8, 0  ;;  %v398_v18 = vrot.slane %v393_v8, 3 }
   0x4   :  { %77 = vperm.xlu2 %1108, %v56_v3   ;;  %v60_v14 = vld [vmem:[%s1625_s0 + $0x40] sm:$0xff]  ;;  %v1225_v16 = vld [vmem:[%s1626_s3 + $0x38] sm:$0xff]  ;;  %v1230_v17 = vld [vmem:[%s1626_s3 + $0x30] sm:$0xff]  ;;  %v397_v19 = vrot.slane %v393_v8, 2  ;;  %v399_v21 = vrot.slane %v393_v8, 4  ;;  %v401_v28 = vrot.slane %v393_v8, 6 }
   0x5   :  { %v404_v15 = vperm.slane %v396_v9, 0  ;;  %163 = vmatpush.msra.mxu0 %v1225_v16  ;;  %vm411_vm0 = vcmp.lt.s32.totalorder %v1217_v12, %v403_v13  ;;  %v1237_v20 = vld [vmem:[%s1626_s3 + $0x28] sm:$0xff]  ;;  %v406_v24 = vperm.slane %v398_v18, 0  ;;  %v400_v29 = vrot.slane %v393_v8, 5  ;;  %v951_v40 = vld [vmem:[%s1625_s0 + $0x58] sm:$0x3] }
   0x6   :  { %v419_v22 = vsel %vm411_vm0, 1, %v1156_v0  ;;  %v61_v23 = vld [vmem:[%s1625_s0 + $0x48] sm:$0xff]  ;;  %v405_v25 = vperm.slane %v397_v19, 0  ;;  %v407_v27 = vperm.slane %v399_v21, 0  ;;  %v402_v30 = vrot.slane %v393_v8, 7  ;;  %v1265_v41 = vld [vmem:[%s1626_s3 + $0x20] sm:$0xff] }
   0x7   :  { %164 = vmatpush.msra.mxu0 %v1230_v17  ;;  %vm412_vm1 = vcmp.lt.s32.totalorder %v1217_v12, %v404_v15  ;;  %vm414_vm2 = vcmp.lt.s32.totalorder %v1217_v12, %v406_v24  ;;  %v409_v33 = vperm.slane %v401_v28, 0  ;;  %v408_v34 = vperm.slane %v400_v29, 0  ;;  %v1270_v42 = vld [vmem:[%s1626_s3 + $0x18] sm:$0xff]  ;;  %v1276_v43 = vld [vmem:[%s1626_s3 + $0x10] sm:$0xff]  ;;  %v1282_v44 = vld [vmem:[%s1626_s3 + $0x8] sm:$0xff] }
   0x8   :  { %v420_v26 = vsel %vm412_vm1, 1, %v1156_v0  ;;  %vm413_vm3 = vcmp.lt.s32.totalorder %v1217_v12, %v405_v25  ;;  %vm415_vm4 = vcmp.lt.s32.totalorder %v1217_v12, %v407_v27  ;;  %v422_v31 = vsel %vm414_vm2, 1, %v1156_v0  ;;  %v1289_v45 = vld [vmem:[%s1626_s3] sm:$0xff]  ;;  %v35_v60 = vld [vmem:[%s1627_s2 + $0x18] sm:$0xff]  ;;  %v34_v62 = vld [vmem:[%s1627_s2 + $0x10] sm:$0xff] }
   0x9   :  { %165 = vmatpush.msra.mxu0 %v1237_v20  ;;  %v421_v32 = vsel %vm413_vm3, 1, %v1156_v0  ;;  %v423_v35 = vsel %vm415_vm4, 1, %v1156_v0  ;;  %v410_v36 = vperm.slane %v402_v30, 0  ;;  %vm417_vm5 = vcmp.lt.s32.totalorder %v1217_v12, %v409_v33  ;;  %v39_v61 = vld [vmem:[%s1627_s2 + $0x38] sm:$0xff]  ;;  %240 = vmatpush.msra.mxu1 %v35_v60  ;;  %v33_v1 = vld [vmem:[%s1627_s2 + $0x8] sm:$0xff]  ;;  %v46_v21 = vld [vmem:[%s1627_s2 + $0x70] sm:$0xff] }
   0xa   :  { %74 = vperm.xlu1 %1107, %v55_v4   ;;  %68 = vperm.xlu0 %1106, %v53_v5   ;;  %vm416_vm6 = vcmp.lt.s32.totalorder %v1217_v12, %v408_v34  ;;  %v425_v37 = vsel %vm417_vm5, 1, %v1156_v0  ;;  %v37_v2 = vld [vmem:[%s1627_s2 + $0x28] sm:$0xff]  ;;  %vm203_vm3 = vcmask 261120   ;;  %v47_v19 = vld [vmem:[%s1627_s2 + $0x78] sm:$0xff]  ;;  %v48_v33 = vld [vmem:[%s1627_s2 + $0x80] sm:$0xff] }
   0xb   :  { %vm418_vm7 = vcmp.lt.s32.totalorder %v1217_v12, %v410_v36  ;;  %v424_v38 = vsel %vm416_vm6, 1, %v1156_v0  ;;  %166 = vmatpush.msra.mxu0 %v1265_v41  ;;  %282 = vmatpush.msra.mxu2 %v39_v61  ;;  %v1109_v34 = vld [vmem:[%s1628_s1] ss:$0 sm:$0xff]  ;;  %v43_v60 = vld [vmem:[%s1627_s2 + $0x58] sm:$0xff] }
   0xc   :  { %80 = vperm.xlu2 %1108, %v57_v6   ;;  %v426_v39 = vsel %vm418_vm7, 1, %v1156_v0  ;;  %v38_v0 = vld [vmem:[%s1627_s2 + $0x30] sm:$0xff]  ;;  %241 = vmatpush.msra.mxu1 %v34_v62 }
   0xd   :  { %167 = vmatpush.msra.mxu0 %v1270_v42  ;;  %283 = vmatpush.msra.mxu2 %v38_v0  ;;  %v42_v62 = vld [vmem:[%s1627_s2 + $0x50] sm:$0xff] }
   0xe   :  { %242 = vmatpush.msra.mxu1 %v33_v1  ;;  %v40_v1 = vld [vmem:[%s1627_s2 + $0x40] sm:$0xff] }
   0xf   :  { %168 = vmatpush.msra.mxu0 %v1276_v43  ;;  %284 = vmatpush.msra.mxu2 %v37_v2 }
  0x11   :  { %169 = vmatpush.msra.mxu0 %v1282_v44 }
  0x12   :  { %86 = vperm.xlu1 %1107, %v59_v10   ;;  %83 = vperm.xlu0 %1106, %v58_v11   ;;  %v32_v10 = vld [vmem:[%s1627_s2] sm:$0xff] }
  0x13   :  { %170 = vmatpush.msra.mxu0 %v1289_v45  ;;  %v36_v11 = vld [vmem:[%s1627_s2 + $0x20] sm:$0xff]  ;;  %243 = vmatpush.msra.mxu1 %v32_v10 }
  0x14   :  { %89 = vperm.xlu2 %1108, %v60_v14   ;;  %285 = vmatpush.msra.mxu2 %v36_v11 }
  0x15   :  { %824 = vmatpush.msrb.mxu1 %v43_v60 }
  0x16   :  { %885 = vmatpush.msrb.mxu2 %v47_v19 }
  0x17   :  { %825 = vmatpush.msrb.mxu1 %v42_v62 }
  0x18   :  { %886 = vmatpush.msrb.mxu2 %v46_v21 }
  0x1a   :  { %428 = vperm.xlu1 %1107, %v419_v22   ;;  %92 = vperm.xlu0 %1106, %v61_v23   ;;  %v45_v22 = vld [vmem:[%s1627_s2 + $0x68] sm:$0xff]  ;;  %v44_v23 = vld [vmem:[%s1627_s2 + $0x60] sm:$0xff] }
  0x1b   :  { %887 = vmatpush.msrb.mxu2 %v45_v22 }
  0x1c   :  { %431 = vperm.xlu2 %1108, %v420_v26   ;;  %v51_v26 = vld [vmem:[%s1627_s2 + $0x98] sm:$0xff] }
  0x1d   :  { %888 = vmatpush.msrb.mxu2 %v44_v23  ;;  %356 = vmatpush.msra.mxu3 %v51_v26 }
  0x22   :  { %437 = vperm.xlu1 %1107, %v422_v31   ;;  %434 = vperm.xlu0 %1106, %v421_v32   ;;  %v50_v31 = vld [vmem:[%s1627_s2 + $0x90] sm:$0xff]  ;;  %v49_v32 = vld [vmem:[%s1627_s2 + $0x88] sm:$0xff] }
  0x23   :  { %357 = vmatpush.msra.mxu3 %v50_v31 }
  0x24   :  { %440 = vperm.xlu2 %1108, %v423_v35  }
  0x25   :  { %358 = vmatpush.msra.mxu3 %v49_v32 }
  0x27   :  { %359 = vmatpush.msra.mxu3 %v48_v33 }
  0x29   :  { %1087 = vmatpush.xpose.msk.msrb.mxu3 %vm203_vm3, %v1225_v16  ;;  %v1110_v16 = vld [vmem:[%s1628_s1 + $0x2] ss:$0 sm:$0xff] }
  0x2a   :  { %446 = vperm.xlu1 %1107, %v425_v37   ;;  %443 = vperm.xlu0 %1106, %v424_v38  }
  0x2c   :  { %449 = vperm.xlu2 %1108, %v426_v39  }
  0x2d   :  { %1088 = vmatpush.xpose.msk.msrb.mxu3 %vm203_vm3, %v1230_v17 }
  0x31   :  { %1089 = vmatpush.xpose.msk.msrb.mxu3 %vm203_vm3, %v1237_v20 }
  0x32   :  { %954 = vperm.xlu0 %1106, %v951_v40  }
  0x35   :  { %1090 = vmatpush.xpose.msk.msrb.mxu3 %vm203_vm3, %v1265_v41 }
  0x39   :  { %1091 = vmatpush.xpose.msk.msrb.mxu3 %vm203_vm3, %v1270_v42 }
  0x3a   :  { %1015 = vrot.lane.b32.xlu0 %v1157_v48, %s1158_s26 }
  0x3d   :  { %1092 = vmatpush.xpose.msk.msrb.mxu3 %vm203_vm3, %v1276_v43 }
  0x41   :  { %1093 = vmatpush.xpose.msk.msrb.mxu3 %vm203_vm3, %v1282_v44 }
  0x45   :  { %1094 = vmatpush.xpose.msk.msrb.mxu3 %vm203_vm3, %v1289_v45 }
  0x5e   :  { %v78_v56 = vpop.permute.xlu2 %77 }
  0x5f   :  { %vm98_vm13 = vcmp.eq.s32.totalorder %v1293_v46, %v78_v56 }
  0x60   :  { %v1044_v57 = vsel %vm98_vm13, 1.0, %v1157_v48 }
  0x66   :  { %v81_v58 = vpop.permute.xlu2 %80 }
  0x67   :  { %vm99_vm14 = vcmp.eq.s32.totalorder %v1293_v46, %v81_v58 }
  0x68   :  { %v1045_v59 = vsel %vm99_vm14, 1.0, %v1157_v48 }
  0x6e   :  { %v90_v6 = vpop.permute.xlu2 %89 }
  0x6f   :  { %vm102_vm1 = vcmp.eq.s32.totalorder %v1293_v46, %v90_v6 }
  0x70   :  { %v1048_v7 = vsel %vm102_vm1, 1.0, %v1157_v48 }
  0x74   :  { %v66_v47 = vpop.permute.xlu0 %65  ;;  %v72_v52 = vpop.permute.xlu1 %71 }
  0x75   :  { %vm94_vm9 = vcmp.eq.s32.totalorder %v1293_v46, %v66_v47  ;;  %vm96_vm11 = vcmp.eq.s32.totalorder %v1293_v46, %v72_v52 }
  0x76   :  { %v1040_v49 = vsel %vm94_vm9, 1.0, %v1157_v48  ;;  %v1042_v53 = vsel %vm96_vm11, 1.0, %v1157_v48  ;;  %v432_v26 = vpop.permute.xlu2 %431 }
  0x77   :  { %1050 = vmatmul.msk.f32.vlgmr.msra.gmra.mxu0 %vm124_vm8, %v1040_v49  ;;  %vm452_vm5 = vcmp.eq.s32.totalorder %v432_v26, 1 }
  0x7c   :  { %v69_v50 = vpop.permute.xlu0 %68  ;;  %v75_v54 = vpop.permute.xlu1 %74 }
  0x7d   :  { %vm95_vm10 = vcmp.eq.s32.totalorder %v1293_v46, %v69_v50  ;;  %vm97_vm12 = vcmp.eq.s32.totalorder %v1293_v46, %v75_v54 }
  0x7e   :  { %v1041_v51 = vsel %vm95_vm10, 1.0, %v1157_v48  ;;  %v1043_v55 = vsel %vm97_vm12, 1.0, %v1157_v48 }
  0x7f   :  { %1051 = vmatmul.msk.f32.gmra.mxu0 %vm124_vm8, %v1041_v51 }
  0x84   :  { %v84_v63 = vpop.permute.xlu0 %83  ;;  %v87_v4 = vpop.permute.xlu1 %86 }
  0x85   :  { %vm100_vm15 = vcmp.eq.s32.totalorder %v1293_v46, %v84_v63  ;;  %vm101_vm0 = vcmp.eq.s32.totalorder %v1293_v46, %v87_v4  ;;  %v41_v63 = vld [vmem:[%s1627_s2 + $0x48] sm:$0xff] }
  0x86   :  { %v1046_v3 = vsel %vm100_vm15, 1.0, %v1157_v48  ;;  %v1047_v5 = vsel %vm101_vm0, 1.0, %v1157_v48  ;;  %826 = vmatpush.msrb.mxu1 %v41_v63 }
  0x87   :  { %1052 = vmatmul.msk.f32.gmra.mxu0 %vm124_vm8, %v1042_v53 }
  0x88   :  { %827 = vmatpush.msrb.mxu1 %v40_v1 }
  0x8c   :  { %v93_v8 = vpop.permute.xlu0 %92 }
  0x8d   :  { %vm103_vm2 = vcmp.eq.s32.totalorder %v1293_v46, %v93_v8 }
  0x8e   :  { %v1049_v9 = vsel %vm103_vm2, 1.0, %v1157_v48 }
  0x8f   :  { %1053 = vmatmul.msk.f32.gmra.mxu0 %vm124_vm8, %v1043_v55 }
  0x97   :  { %1054 = vmatmul.msk.f32.gmra.mxu0 %vm124_vm8, %v1044_v57 }
  0x9f   :  { %1055 = vmatmul.msk.f32.gmra.mxu0 %vm124_vm8, %v1045_v59 }
  0xa7   :  { %1056 = vmatmul.msk.f32.gmra.mxu0 %vm124_vm8, %v1046_v3 }
  0xaf   :  { %1057 = vmatmul.msk.f32.gmra.mxu0 %vm124_vm8, %v1047_v5 }
  0xb7   :  { %1058 = vmatmul.msk.f32.gmra.mxu0 %vm124_vm8, %v1048_v7  ;;  %v1112_v7 = vld [vmem:[%s1628_s1 + $0x6] ss:$0 sm:$0xff] }
  0xbf   :  { %1059 = vmatmul.msk.f32.gmra.mxu0 %vm124_vm8, %v1049_v9 }
  0xf4   :  { %v172_v13 = vpop.f32.mrf.mxu0 }
  0xf5   :  { %1060 = vmatmul.msk.f32.vlgmr.msra.gmra.mxu1 %vm203_vm3, %v172_v13  ;;  %1068 = vmatmul.msk.f32.vlgmr.msra.gmra.mxu2 %vm203_vm3, %v172_v13 }
  0xfc   :  { %v175_v14 = vpop.f32.mrf.mxu0 }
  0xfd   :  { %1061 = vmatmul.msk.f32.gmra.mxu1 %vm203_vm3, %v175_v14  ;;  %1069 = vmatmul.msk.f32.gmra.mxu2 %vm203_vm3, %v175_v14 }
 0x104   :  { %v178_v15 = vpop.f32.mrf.mxu0 }
 0x105   :  { %1062 = vmatmul.msk.f32.gmra.mxu1 %vm203_vm3, %v178_v15  ;;  %1070 = vmatmul.msk.f32.gmra.mxu2 %vm203_vm3, %v178_v15  ;;  %v429_v15 = vpop.permute.xlu1 %428 }
 0x106   :  { %vm451_vm4 = vcmp.eq.s32.totalorder %v429_v15, 1 }
 0x10c   :  { %v181_v18 = vpop.f32.mrf.mxu0 }
 0x10d   :  { %1063 = vmatmul.msk.f32.gmra.mxu1 %vm203_vm3, %v181_v18  ;;  %1071 = vmatmul.msk.f32.gmra.mxu2 %vm203_vm3, %v181_v18 }
 0x114   :  { %v184_v24 = vpop.f32.mrf.mxu0 }
 0x115   :  { %1064 = vmatmul.msk.f32.gmra.mxu1 %vm203_vm3, %v184_v24  ;;  %1072 = vmatmul.msk.f32.gmra.mxu2 %vm203_vm3, %v184_v24 }
 0x11c   :  { %v187_v25 = vpop.f32.mrf.mxu0 }
 0x11d   :  { %1065 = vmatmul.msk.f32.gmra.mxu1 %vm203_vm3, %v187_v25  ;;  %1073 = vmatmul.msk.f32.gmra.mxu2 %vm203_vm3, %v187_v25 }
 0x124   :  { %v190_v27 = vpop.f32.mrf.mxu0 }
 0x125   :  { %1066 = vmatmul.msk.f32.gmra.mxu1 %vm203_vm3, %v190_v27  ;;  %1074 = vmatmul.msk.f32.gmra.mxu2 %vm203_vm3, %v190_v27 }
 0x12c   :  { %v193_v28 = vpop.f32.mrf.mxu0 }
 0x12d   :  { %1067 = vmatmul.msk.f32.gmra.mxu1 %vm203_vm3, %v193_v28  ;;  %1075 = vmatmul.msk.f32.gmra.mxu2 %vm203_vm3, %v193_v28 }
 0x134   :  { %v196_v29 = vpop.f32.mrf.mxu0 }
 0x135   :  { %1085 = vmatmul.msk.f32.vlgmr.msrb.gmra.mxu2 %vm203_vm3, %v196_v29 }
 0x13c   :  { %v199_v30 = vpop.f32.mrf.mxu0 }
 0x13d   :  { %1086 = vmatmul.msk.f32.gmra.mxu2 %vm203_vm3, %v199_v30 }
 0x172   :  { %v245_v17 = vpop.f32.mrf.mxu1 }
 0x173   :  { %v246_v20 = vadd.f32 %v1109_v34, %v245_v17 }
 0x175   :  { %v312_v35 = vmul.f32 %v1110_v16, %v246_v20 }
 0x177   :  { %1076 = vmatmul.msk.f32.vlgmr.msra.gmra.mxu3 %vm203_vm3, %v312_v35 }
 0x178   :  { %v1416_v36 = vpop.f32.mrf.mxu2 }
 0x17a   :  { %v248_v37 = vpop.f32.mrf.mxu1 }
 0x17b   :  { %v249_v38 = vadd.f32 %v1109_v34, %v248_v37 }
 0x17d   :  { %v313_v39 = vmul.f32 %v1110_v16, %v249_v38 }
 0x17f   :  { %1077 = vmatmul.msk.f32.gmra.mxu3 %vm203_vm3, %v313_v39 }
 0x180   :  { %v1419_v40 = vpop.f32.mrf.mxu2 }
 0x182   :  { %v251_v41 = vpop.f32.mrf.mxu1 }
 0x183   :  { %v252_v42 = vadd.f32 %v1109_v34, %v251_v41 }
 0x185   :  { %v314_v43 = vmul.f32 %v1110_v16, %v252_v42 }
 0x187   :  { %1078 = vmatmul.msk.f32.gmra.mxu3 %vm203_vm3, %v314_v43 }
 0x188   :  { %v1422_v44 = vpop.f32.mrf.mxu2 }
 0x18a   :  { %v254_v45 = vpop.f32.mrf.mxu1 }
 0x18b   :  { %v255_v47 = vadd.f32 %v1109_v34, %v254_v45 }
 0x18d   :  { %v315_v49 = vmul.f32 %v1110_v16, %v255_v47 }
 0x18f   :  { %1079 = vmatmul.msk.f32.gmra.mxu3 %vm203_vm3, %v315_v49  ;;  %v438_v49 = vpop.permute.xlu1 %437 }
 0x190   :  { %v1425_v50 = vpop.f32.mrf.mxu2  ;;  %vm454_vm7 = vcmp.eq.s32.totalorder %v438_v49, 1 }
 0x192   :  { %v257_v51 = vpop.f32.mrf.mxu1 }
 0x193   :  { %v258_v52 = vadd.f32 %v1109_v34, %v257_v51 }
 0x195   :  { %v316_v53 = vmul.f32 %v1110_v16, %v258_v52 }
 0x197   :  { %1080 = vmatmul.msk.f32.gmra.mxu3 %vm203_vm3, %v316_v53 }
 0x198   :  { %v1428_v54 = vpop.f32.mrf.mxu2 }
 0x19a   :  { %v260_v55 = vpop.f32.mrf.mxu1 }
 0x19b   :  { %v261_v56 = vadd.f32 %v1109_v34, %v260_v55 }
 0x19d   :  { %v317_v57 = vmul.f32 %v1110_v16, %v261_v56 }
 0x19f   :  { %1081 = vmatmul.msk.f32.gmra.mxu3 %vm203_vm3, %v317_v57 }
 0x1a0   :  { %v1431_v58 = vpop.f32.mrf.mxu2 }
 0x1a2   :  { %v263_v59 = vpop.f32.mrf.mxu1 }
 0x1a3   :  { %v264_v61 = vadd.f32 %v1109_v34, %v263_v59 }
 0x1a5   :  { %v318_v0 = vmul.f32 %v1110_v16, %v264_v61 }
 0x1a7   :  { %1082 = vmatmul.msk.f32.gmra.mxu3 %vm203_vm3, %v318_v0 }
 0x1a8   :  { %v1446_v2 = vpop.f32.mrf.mxu2 }
 0x1aa   :  { %v266_v3 = vpop.f32.mrf.mxu1 }
 0x1ab   :  { %v267_v4 = vadd.f32 %v1109_v34, %v266_v3  ;;  %v435_v34 = vpop.permute.xlu0 %434 }
 0x1ac   :  { %vm453_vm6 = vcmp.eq.s32.totalorder %v435_v34, 1 }
 0x1ad   :  { %v319_v5 = vmul.f32 %v1110_v16, %v267_v4 }
 0x1af   :  { %1083 = vmatmul.msk.f32.gmra.mxu3 %vm203_vm3, %v319_v5 }
 0x1b0   :  { %v1449_v6 = vpop.f32.mrf.mxu2 }
 0x1b8   :  { %v890_v8 = vpop.f32.mrf.mxu2 }
 0x1b9   :  { %v891_v9 = vadd.f32 %v1112_v7, %v890_v8 }
 0x1bb   :  { %1116 = vtanh.f32 %v891_v9 }
 0x1c0   :  { %v893_v10 = vpop.f32.mrf.mxu2 }
 0x1c1   :  { %v1117_v11 = vpop.eup %1116  ;;  %v894_v13 = vadd.f32 %v1112_v7, %v893_v10  ;;  %v441_v10 = vpop.permute.xlu2 %440 }
 0x1c2   :  { %1095 = vmatmul.msk.f32.vlgmr.msrb.gmra.mxu3 %vm203_vm3, %v1117_v11  ;;  %vm455_vm9 = vcmp.eq.s32.totalorder %v441_v10, 1 }
 0x1c3   :  { %1118 = vtanh.f32 %v894_v13 }
 0x1c9   :  { %v1119_v14 = vpop.eup %1118 }
 0x1ca   :  { %1096 = vmatmul.msk.f32.gmra.mxu3 %vm203_vm3, %v1119_v14  ;;  %978 = vmatpush.msra.mxu1 %v1119_v14 }
 0x1cc   :  { %979 = vmatpush.msra.mxu1 %v1117_v11 }
 0x1fa   :  { %v361_v18 = vpop.f32.mrf.mxu3 }
 0x1fb   :  { %v385_v19 = vmul.f32 0.35355338, %v361_v18 }
 0x1fd   :  { %v459_v21 = vsel %vm451_vm4, %v385_v19, -1e+15 }
 0x1fe   :  { %v467_v22 = vsel %vm203_vm3, %v459_v21, -inf }
 0x1ff   :  { %v468_v23 = vrot.slane %v467_v22, 4 }
 0x201   :  { %v469_v24 = vmax.f32 %v467_v22, %v468_v23 }
 0x202   :  { %v364_v25 = vpop.f32.mrf.mxu3 }
 0x203   :  { %v470_v27 = vrot.slane %v469_v24, 2  ;;  %v386_v28 = vmul.f32 0.35355338, %v364_v25 }
 0x205   :  { %v471_v29 = vmax.f32 %v469_v24, %v470_v27  ;;  %v460_v30 = vsel %vm452_vm5, %v386_v28, -1e+15 }
 0x206   :  { %v474_v31 = vsel %vm203_vm3, %v460_v30, -inf }
 0x207   :  { %v472_v32 = vrot.slane %v471_v29, 1  ;;  %v475_v33 = vrot.slane %v474_v31, 4 }
 0x209   :  { %v473_v16 = vmax.f32 %v471_v29, %v472_v32  ;;  %v476_v17 = vmax.f32 %v474_v31, %v475_v33  ;;  %v444_v33 = vpop.permute.xlu0 %443 }
 0x20a   :  { %v367_v20 = vpop.f32.mrf.mxu3  ;;  %vm456_vm10 = vcmp.eq.s32.totalorder %v444_v33, 1 }
 0x20b   :  { %v523_v35 = vsub.f32 %v459_v21, %v473_v16  ;;  %v477_v37 = vrot.slane %v476_v17, 2  ;;  %v387_v38 = vmul.f32 0.35355338, %v367_v20 }
 0x20d   :  { %v531_v39 = vmul.f32 1.442695, %v523_v35  ;;  %v478_v41 = vmax.f32 %v476_v17, %v477_v37  ;;  %v461_v42 = vsel %vm453_vm6, %v387_v38, -1e+15 }
 0x20e   :  { %v481_v43 = vsel %vm203_vm3, %v461_v42, -inf }
 0x20f   :  { %1120 = vpow2.f32 %v531_v39  ;;  %v479_v45 = vrot.slane %v478_v41, 1  ;;  %v482_v47 = vrot.slane %v481_v43, 4 }
 0x211   :  { %v480_v51 = vmax.f32 %v478_v41, %v479_v45  ;;  %v483_v52 = vmax.f32 %v481_v43, %v482_v47 }
 0x212   :  { %v370_v53 = vpop.f32.mrf.mxu3 }
 0x213   :  { %v524_v55 = vsub.f32 %v460_v30, %v480_v51  ;;  %v484_v56 = vrot.slane %v483_v52, 2  ;;  %v388_v57 = vmul.f32 0.35355338, %v370_v53 }
 0x215   :  { %v1459_v59 = vpop.eup %1120  ;;  %v533_v60 = vmul.f32 1.442695, %v524_v55  ;;  %v485_v61 = vmax.f32 %v483_v52, %v484_v56  ;;  %v462_v62 = vsel %vm454_vm7, %v388_v57, -1e+15  ;;  %v447_v55 = vpop.permute.xlu1 %446 }
 0x216   :  { %v547_v63 = vsel %vm203_vm3, %v1459_v59, 0.0  ;;  %v488_v0 = vsel %vm203_vm3, %v462_v62, -inf  ;;  %vm457_vm11 = vcmp.eq.s32.totalorder %v447_v55, 1 }
 0x217   :  { %v548_v1 = vrot.slane %v547_v63, 4  ;;  %1122 = vpow2.f32 %v533_v60  ;;  %v486_v3 = vrot.slane %v485_v61, 1  ;;  %v489_v4 = vrot.slane %v488_v0, 4 }
 0x219   :  { %v549_v5 = vadd.f32 %v548_v1, %v547_v63  ;;  %v487_v7 = vmax.f32 %v485_v61, %v486_v3  ;;  %v490_v8 = vmax.f32 %v488_v0, %v489_v4 }
 0x21a   :  { %v373_v9 = vpop.f32.mrf.mxu3 }
 0x21b   :  { %v550_v11 = vrot.slane %v549_v5, 2  ;;  %v525_v13 = vsub.f32 %v461_v42, %v487_v7  ;;  %v491_v14 = vrot.slane %v490_v8, 2  ;;  %v389_v15 = vmul.f32 0.35355338, %v373_v9 }
 0x21d   :  { %v1464_v18 = vpop.eup %1122  ;;  %v551_v19 = vadd.f32 %v550_v11, %v549_v5  ;;  %v535_v21 = vmul.f32 1.442695, %v525_v13  ;;  %v492_v22 = vmax.f32 %v490_v8, %v491_v14  ;;  %v463_v23 = vsel %vm455_vm9, %v389_v15, -1e+15 }
 0x21e   :  { %v554_v24 = vsel %vm203_vm3, %v1464_v18, 0.0  ;;  %v495_v25 = vsel %vm203_vm3, %v463_v23, -inf }
 0x21f   :  { %v552_v26 = vrot.slane %v551_v19, 1  ;;  %v555_v27 = vrot.slane %v554_v24, 4  ;;  %1124 = vpow2.f32 %v535_v21  ;;  %v493_v28 = vrot.slane %v492_v22, 1 }
 0x220   :  { %v496_v29 = vrot.slane %v495_v25, 4 }
 0x221   :  { %v1469_v30 = vadd.f32 %v552_v26, %v551_v19  ;;  %v556_v31 = vadd.f32 %v555_v27, %v554_v24  ;;  %v494_v32 = vmax.f32 %v492_v22, %v493_v28  ;;  %v450_v22 = vpop.permute.xlu2 %449 }
 0x222   :  { %v497_v34 = vmax.f32 %v495_v25, %v496_v29  ;;  %v376_v16 = vpop.f32.mrf.mxu3  ;;  %vm458_vm0 = vcmp.eq.s32.totalorder %v450_v22, 1 }
 0x223   :  { %1126 = vrcp.f32 %v1469_v30  ;;  %v557_v17 = vrot.slane %v556_v31, 2  ;;  %v526_v20 = vsub.f32 %v462_v62, %v494_v32  ;;  %v390_v37 = vmul.f32 0.35355338, %v376_v16 }
 0x224   :  { %v498_v35 = vrot.slane %v497_v34, 2  ;;  %v614_v5 = vand.u32 2147483648, %v1469_v30  ;;  %v612_v13 = vand.u32 2147483647, %v1469_v30  ;;  %vm608_vm13 = vweird.f32 %v1469_v30 }
 0x225   :  { %v1472_v38 = vpop.eup %1124  ;;  %v558_v39 = vadd.f32 %v557_v17, %v556_v31  ;;  %v537_v42 = vmul.f32 1.442695, %v526_v20  ;;  %v1476_v47 = vsel %vm456_vm10, %v390_v37, -1e+15 }
 0x226   :  { %v561_v41 = vsel %vm203_vm3, %v1472_v38, 0.0  ;;  %v499_v43 = vmax.f32 %v497_v34, %v498_v35  ;;  %v502_v52 = vsel %vm203_vm3, %v1476_v47, -inf  ;;  %v615_v28 = vor.u32 1.1754944e-38, %v614_v5 }
 0x227   :  { %v562_v45 = vrot.slane %v561_v41, 4  ;;  %v559_v49 = vrot.slane %v558_v39, 1  ;;  %1128 = vpow2.f32 %v537_v42  ;;  %v503_v57 = vrot.slane %v502_v52, 4 }
 0x228   :  { %v500_v51 = vrot.slane %v499_v43, 1  ;;  %vm613_vm15 = vcmp.eq.f32.partialorder %v612_v13, 8.507059e+37 }
 0x229   :  { %v1127_v53 = vpop.eup %1126  ;;  %v563_v56 = vadd.f32 %v562_v45, %v561_v41  ;;  %v1481_v61 = vadd.f32 %v559_v49, %v558_v39  ;;  %v504_v1 = vmax.f32 %v502_v52, %v503_v57 }
 0x22a   :  { %v604_v60 = vmul.f32 %v1127_v53, %v1469_v30  ;;  %v501_v62 = vmax.f32 %v499_v43, %v500_v51  ;;  %v379_v63 = vpop.f32.mrf.mxu3  ;;  %vm609_vm12 = vweird.f32 %v1127_v53 }
 0x22b   :  { %v564_v0 = vrot.slane %v563_v56, 2  ;;  %v391_v3 = vmul.f32 0.35355338, %v379_v63  ;;  %1130 = vrcp.f32 %v1481_v61  ;;  %v505_v9 = vrot.slane %v504_v1, 2  ;;  %vm610_vm14 = vmor %vm608_vm13, %vm609_vm12 }
 0x22c   :  { %v605_v4 = vsub.f32 1.0, %v604_v60  ;;  %v527_v8 = vsub.f32 %v463_v23, %v501_v62  ;;  %v1496_v23 = vld [vmem:[%s1628_s1 + $0x1] ss:$0 sm:$0xff]  ;;  %v627_v39 = vand.u32 2147483647, %v1481_v61  ;;  %v629_v41 = vand.u32 2147483648, %v1481_v61 }
 0x22d   :  { %v565_v7 = vadd.f32 %v564_v0, %v563_v56  ;;  %v1485_v10 = vpop.eup %1128  ;;  %v1488_v14 = vsel %vm457_vm11, %v391_v3, -1e+15  ;;  %v506_v26 = vmax.f32 %v504_v1, %v505_v9  ;;  %v288_v35 = vadd.f32 %v1496_v23, %v1416_v36 }
 0x22e   :  { %v606_v11 = vmul.f32 %v1127_v53, %v605_v4  ;;  %v568_v19 = vsel %vm203_vm3, %v1485_v10, 0.0  ;;  %v539_v21 = vmul.f32 1.442695, %v527_v8  ;;  %v509_v27 = vsel %vm203_vm3, %v1488_v14, -inf }
 0x22f   :  { %v566_v15 = vrot.slane %v565_v7, 1  ;;  %v569_v25 = vrot.slane %v568_v19, 4  ;;  %v510_v30 = vrot.slane %v509_v27, 4  ;;  %v507_v34 = vrot.slane %v506_v26, 1 }
 0x230   :  { %v607_v24 = vadd.f32 %v1127_v53, %v606_v11  ;;  %1132 = vpow2.f32 %v539_v21  ;;  %vm623_vm1 = vweird.f32 %v1481_v61  ;;  %vm1514_vm4 = vcmp.eq.f32.partialorder %v627_v39, 8.507059e+37 }
 0x231   :  { %v1500_v29 = vadd.f32 %v566_v15, %v565_v7  ;;  %v1131_v31 = vpop.eup %1130  ;;  %v570_v33 = vadd.f32 %v569_v25, %v568_v19  ;;  %v508_v45 = vmax.f32 %v506_v26, %v507_v34  ;;  %v511_v49 = vmax.f32 %v509_v27, %v510_v30 }
 0x232   :  { %v611_v32 = vsel %vm610_vm14, %v1127_v53, %v607_v24  ;;  %v619_v17 = vmul.f32 %v1131_v31, %v1481_v61  ;;  %v382_v20 = vpop.f32.mrf.mxu3  ;;  %vm624_vm2 = vweird.f32 %v1131_v31  ;;  %v630_v62 = vor.u32 1.1754944e-38, %v629_v41 }
 0x233   :  { %v616_v16 = vsel %vm613_vm15, %v615_v28, %v611_v32  ;;  %1134 = vrcp.f32 %v1500_v29  ;;  %v571_v43 = vrot.slane %v570_v33, 2  ;;  %v392_v52 = vmul.f32 0.35355338, %v382_v20  ;;  %vm625_vm5 = vmor %vm623_vm1, %vm624_vm2 }
 0x234   :  { %v617_v37 = vmul.f32 %v1459_v59, %v616_v16  ;;  %v620_v42 = vsub.f32 1.0, %v619_v17  ;;  %v528_v36 = vsub.f32 %v1476_v47, %v508_v45  ;;  %v512_v59 = vrot.slane %v511_v49, 2 }
 0x235   :  { %v572_v56 = vadd.f32 %v571_v43, %v570_v33  ;;  %v642_v3 = vand.u32 2147483647, %v1500_v29  ;;  %v1528_v19 = vsel %vm458_vm0, %v392_v52, -1e+15  ;;  %v291_v61 = vadd.f32 %v1496_v23, %v1419_v40 }
 0x236   :  { %v723_v51 = vmul.f32 %v617_v37, %v288_v35  ;;  %v1510_v53 = vpop.eup %1132  ;;  %v621_v55 = vmul.f32 %v1131_v31, %v620_v42  ;;  %v541_v8 = vmul.f32 1.442695, %v528_v36  ;;  %v513_v9 = vmax.f32 %v511_v49, %v512_v59 }
 0x237   :  { %v575_v63 = vsel %vm203_vm3, %v1510_v53, 0.0  ;;  %v573_v4 = vrot.slane %v572_v56, 1  ;;  %v644_v27 = vand.u32 2147483648, %v1500_v29  ;;  %v516_v33 = vsel %vm203_vm3, %v1528_v19, -inf }
 0x238   :  { %v731_v57 = vsel %vm203_vm3, %v723_v51, 0.0  ;;  %v622_v1 = vadd.f32 %v1131_v31, %v621_v55  ;;  %v576_v5 = vrot.slane %v575_v63, 4  ;;  %1136 = vpow2.f32 %v541_v8 }
 0x239   :  { %v1135_v0 = vpop.eup %1134  ;;  %v732_v7 = vrot.slane %v731_v57, 4  ;;  %v1525_v13 = vadd.f32 %v573_v4, %v572_v56  ;;  %v514_v25 = vrot.slane %v513_v9, 1  ;;  %vm638_vm7 = vweird.f32 %v1500_v29 }
 0x23a   :  { %v634_v47 = vmul.f32 %v1135_v0, %v1500_v29  ;;  %v626_v11 = vsel %vm625_vm5, %v1131_v31, %v622_v1  ;;  %v577_v15 = vadd.f32 %v576_v5, %v575_v63  ;;  %vm639_vm6 = vweird.f32 %v1135_v0 }
 0x23b   :  { %v631_v21 = vsel %vm1514_vm4, %v630_v62, %v626_v11  ;;  %1138 = vrcp.f32 %v1525_v13  ;;  %v733_v28 = vadd.f32 %v732_v7, %v731_v57  ;;  %v515_v32 = vmax.f32 %v513_v9, %v514_v25  ;;  %vm640_vm10 = vmor %vm638_vm7, %vm639_vm6 }
 0x23c   :  { %v635_v24 = vsub.f32 1.0, %v634_v47  ;;  %v632_v26 = vmul.f32 %v1464_v18, %v631_v21  ;;  %v578_v22 = vrot.slane %v577_v15, 2  ;;  %vm643_vm9 = vcmp.eq.f32.partialorder %v642_v3, 8.507059e+37 }
 0x23d   :  { %v645_v16 = vor.u32 1.1754944e-38, %v644_v27  ;;  %v529_v17 = vsub.f32 %v1488_v14, %v515_v32  ;;  %v517_v20 = vrot.slane %v516_v33, 4  ;;  %v734_v37 = vrot.slane %v733_v28, 2 }
 0x23e   :  { %v636_v30 = vmul.f32 %v1135_v0, %v635_v24  ;;  %v724_v31 = vmul.f32 %v632_v26, %v291_v61  ;;  %v579_v40 = vadd.f32 %v578_v22, %v577_v15  ;;  %v1542_v35 = vpop.eup %1136  ;;  %v294_v45 = vadd.f32 %v1496_v23, %v1422_v44 }
 0x23f   :  { %v582_v49 = vsel %vm203_vm3, %v1542_v35, 0.0  ;;  %v543_v51 = vmul.f32 1.442695, %v529_v17  ;;  %v657_v56 = vand.u32 2147483647, %v1525_v13  ;;  %v518_v57 = vmax.f32 %v516_v33, %v517_v20 }
 0x240   :  { %v637_v34 = vadd.f32 %v1135_v0, %v636_v30  ;;  %v738_v18 = vsel %vm203_vm3, %v724_v31, 0.0  ;;  %v580_v42 = vrot.slane %v579_v40, 1  ;;  %v583_v59 = vrot.slane %v582_v49, 4 }
 0x241   :  { %v739_v39 = vrot.slane %v738_v18, 4  ;;  %v1139_v43 = vpop.eup %1138  ;;  %1140 = vpow2.f32 %v543_v51  ;;  %v735_v60 = vadd.f32 %v734_v37, %v733_v28  ;;  %v659_v1 = vand.u32 2147483648, %v1525_v13 }
 0x242   :  { %v641_v41 = vsel %vm640_vm10, %v1135_v0, %v637_v34  ;;  %v649_v14 = vmul.f32 %v1139_v43, %v1525_v13  ;;  %v1551_v36 = vadd.f32 %v580_v42, %v579_v40  ;;  %v297_v0 = vadd.f32 %v1496_v23, %v1425_v50 }
 0x243   :  { %v646_v29 = vsel %vm643_vm9, %v645_v16, %v641_v41  ;;  %v740_v52 = vadd.f32 %v739_v39, %v738_v18  ;;  %vm654_vm11 = vweird.f32 %v1139_v43  ;;  %v584_v5 = vadd.f32 %v583_v59, %v582_v49 }
 0x244   :  { %v647_v55 = vmul.f32 %v1472_v38, %v646_v29  ;;  %v650_v63 = vsub.f32 1.0, %v649_v14  ;;  %1142 = vrcp.f32 %v1551_v36  ;;  %vm653_vm12 = vweird.f32 %v1525_v13 }
 0x245   :  { %v741_v62 = vrot.slane %v740_v52, 2  ;;  %vm1559_vm13 = vcmp.eq.f32.partialorder %v657_v56, 8.507059e+37  ;;  %v519_v8 = vrot.slane %v518_v57, 2  ;;  %v736_v9 = vrot.slane %v735_v60, 1  ;;  %vm655_vm14 = vmor %vm653_vm12, %vm654_vm11 }
 0x246   :  { %v725_v44 = vmul.f32 %v647_v55, %v294_v45  ;;  %v651_v4 = vmul.f32 %v1139_v43, %v650_v63  ;;  %v585_v15 = vrot.slane %v584_v5, 2  ;;  %v660_v25 = vor.u32 1.1754944e-38, %v659_v1 }
 0x247   :  { %v742_v38 = vadd.f32 %v741_v62, %v740_v52  ;;  %v1563_v21 = vpop.eup %1140  ;;  %v520_v61 = vmax.f32 %v518_v57, %v519_v8  ;;  %vm796_vm15 = vcmask 1041409   ;;  %v737_v34 = vadd.f32 %v736_v9, %v735_v60 }
 0x248   :  { %v745_v3 = vsel %vm203_vm3, %v725_v44, 0.0  ;;  %v652_v11 = vadd.f32 %v1139_v43, %v651_v4  ;;  %v586_v13 = vadd.f32 %v585_v15, %v584_v5  ;;  %v589_v28 = vsel %vm203_vm3, %v1563_v21, 0.0 }
 0x249   :  { %v746_v7 = vrot.slane %v745_v3, 4  ;;  %v743_v50 = vrot.slane %v742_v38, 1  ;;  %v590_v32 = vrot.slane %v589_v28, 4  ;;  %v521_v33 = vrot.slane %v520_v61, 1 }
 0x24a   :  { %v656_v27 = vsel %vm655_vm14, %v1139_v43, %v652_v11  ;;  %v1143_v30 = vpop.eup %1142  ;;  %v587_v16 = vrot.slane %v586_v13, 1  ;;  %v672_v20 = vand.u32 2147483647, %v1551_v36  ;;  %v674_v49 = vand.u32 2147483648, %v1551_v36 }
 0x24b   :  { %v747_v24 = vadd.f32 %v746_v7, %v745_v3  ;;  %v744_v26 = vadd.f32 %v743_v50, %v742_v38  ;;  %v661_v31 = vsel %vm1559_vm13, %v660_v25, %v656_v27  ;;  %v664_v18 = vmul.f32 %v1143_v30, %v1551_v36 }
 0x24c   :  { %v662_v40 = vmul.f32 %v1485_v10, %v661_v31  ;;  %v591_v37 = vadd.f32 %v590_v32, %v589_v28  ;;  %v522_v39 = vmax.f32 %v520_v61, %v521_v33  ;;  %v588_v43 = vadd.f32 %v587_v16, %v586_v13 }
 0x24d   :  { %v748_v22 = vrot.slane %v747_v24, 2  ;;  %v665_v42 = vsub.f32 1.0, %v664_v18  ;;  %v797_v45 = vsel %vm796_vm15, %v744_v26, %v737_v34  ;;  %vm669_vm0 = vweird.f32 %v1143_v30 }
 0x24e   :  { %v726_v41 = vmul.f32 %v662_v40, %v297_v0  ;;  %v592_v51 = vrot.slane %v591_v37, 2  ;;  %v530_v52 = vsub.f32 %v1528_v19, %v522_v39  ;;  %1144 = vrcp.f32 %v588_v43 }
 0x24f   :  { %v749_v17 = vadd.f32 %v748_v22, %v747_v24  ;;  %v666_v55 = vmul.f32 %v1143_v30, %v665_v42  ;;  %vm798_vm1 = vcmask 1042434   ;;  %vm668_vm2 = vweird.f32 %v1551_v36 }
 0x250   :  { %v752_v10 = vsel %vm203_vm3, %v726_v41, 0.0  ;;  %v593_v56 = vadd.f32 %v592_v51, %v591_v37  ;;  %v545_v57 = vmul.f32 1.442695, %v530_v52  ;;  %vm670_vm4 = vmor %vm668_vm2, %vm669_vm0  ;;  %v675_v44 = vor.u32 1.1754944e-38, %v674_v49 }
 0x251   :  { %v750_v29 = vrot.slane %v749_v17, 1  ;;  %v753_v14 = vrot.slane %v752_v10, 4  ;;  %v667_v59 = vadd.f32 %v1143_v30, %v666_v55  ;;  %vm673_vm5 = vcmp.eq.f32.partialorder %v672_v20, 8.507059e+37 }
 0x252   :  { %v594_v63 = vrot.slane %v593_v56, 1  ;;  %1146 = vpow2.f32 %v545_v57  ;;  %v300_v5 = vadd.f32 %v1496_v23, %v1428_v54  ;;  %vm800_vm6 = vcmask 1043459  }
 0x253   :  { %v751_v60 = vadd.f32 %v750_v29, %v749_v17  ;;  %v754_v62 = vadd.f32 %v753_v14, %v752_v10  ;;  %v671_v0 = vsel %vm670_vm4, %v1143_v30, %v667_v59  ;;  %v687_v24 = vand.u32 2147483647, %v588_v43 }
 0x254   :  { %v676_v38 = vsel %vm673_vm5, %v675_v44, %v671_v0  ;;  %v595_v3 = vadd.f32 %v594_v63, %v593_v56  ;;  %v1145_v4 = vpop.eup %1144  ;;  %v689_v25 = vand.u32 2147483648, %v588_v43  ;;  %vm683_vm9 = vweird.f32 %v588_v43 }
 0x255   :  { %v799_v19 = vsel %vm798_vm1, %v751_v60, %v797_v45  ;;  %v755_v1 = vrot.slane %v754_v62, 2  ;;  %v677_v7 = vmul.f32 %v1510_v53, %v676_v38  ;;  %v679_v47 = vmul.f32 %v1145_v4, %v588_v43 }
 0x256   :  { %1148 = vrcp.f32 %v595_v3  ;;  %vm684_vm7 = vweird.f32 %v1145_v4  ;;  %v690_v31 = vor.u32 1.1754944e-38, %v689_v25  ;;  %vm688_vm11 = vcmp.eq.f32.partialorder %v687_v24, 8.507059e+37 }
 0x257   :  { %v756_v36 = vadd.f32 %v755_v1, %v754_v62  ;;  %v727_v8 = vmul.f32 %v677_v7, %v300_v5  ;;  %v680_v9 = vsub.f32 1.0, %v679_v47  ;;  %vm685_vm10 = vmor %vm683_vm9, %vm684_vm7  ;;  %v303_v20 = vadd.f32 %v1496_v23, %v1431_v58 }
 0x258   :  { %v1581_v11 = vpop.eup %1146  ;;  %v704_v39 = vand.u32 2147483648, %v595_v3  ;;  %v702_v43 = vand.u32 2147483647, %v595_v3  ;;  %vm698_vm13 = vweird.f32 %v595_v3  ;;  %vm802_vm14 = vcmask 1044484  }
 0x259   :  { %v757_v50 = vrot.slane %v756_v36, 1  ;;  %v759_v15 = vsel %vm203_vm3, %v727_v8, 0.0  ;;  %v681_v26 = vmul.f32 %v1145_v4, %v680_v9  ;;  %v596_v54 = vsel %vm203_vm3, %v1581_v11, 0.0 }
 0x25a   :  { %v760_v61 = vrot.slane %v759_v15, 4  ;;  %v597_v27 = vrot.slane %v596_v54, 4  ;;  %v705_v55 = vor.u32 1.1754944e-38, %v704_v39  ;;  %vm703_vm0 = vcmp.eq.f32.partialorder %v702_v43, 8.507059e+37 }
 0x25b   :  { %v758_v53 = vadd.f32 %v757_v50, %v756_v36  ;;  %v682_v30 = vadd.f32 %v1145_v4, %v681_v26  ;;  %v306_v60 = vadd.f32 %v1496_v23, %v1446_v2  ;;  %vm804_vm1 = vcmask 1045509  }
 0x25c   :  { %v1149_v13 = vpop.eup %1148  ;;  %v761_v28 = vadd.f32 %v760_v61, %v759_v15  ;;  %v598_v33 = vadd.f32 %v597_v27, %v596_v54  ;;  %v309_v27 = vadd.f32 %v1496_v23, %v1449_v6  ;;  %vm808_vm9 = vcmask 1047559   ;;  %v1113_v23 = vld [vmem:[%s1628_s1 + $0x3] ss:$0 sm:$0xff] }
 0x25d   :  { %v801_v22 = vsel %vm800_vm6, %v758_v53, %v799_v19  ;;  %v694_v32 = vmul.f32 %v1149_v13, %v595_v3  ;;  %v686_v40 = vsel %vm685_vm10, %v1145_v4, %v682_v30  ;;  %vm699_vm12 = vweird.f32 %v1149_v13 }
 0x25e   :  { %v762_v34 = vrot.slane %v761_v28, 2  ;;  %v691_v18 = vsel %vm688_vm11, %v690_v31, %v686_v40  ;;  %v599_v17 = vrot.slane %v598_v33, 2  ;;  %vm700_vm15 = vmor %vm698_vm13, %vm699_vm12  ;;  %vm806_vm6 = vcmask 1046534  }
 0x25f   :  { %v695_v16 = vsub.f32 1.0, %v694_v32  ;;  %v692_v37 = vmul.f32 %v1542_v35, %v691_v18  ;;  %v952_v18 = vmul.u32 8, %v1217_v12  ;;  %vm960_vm11 = vcmask 130048  }
 0x260   :  { %v763_v41 = vadd.f32 %v762_v34, %v761_v28  ;;  %v600_v45 = vadd.f32 %v599_v17, %v598_v33 }
 0x261   :  { %v696_v42 = vmul.f32 %v1149_v13, %v695_v16  ;;  %v728_v29 = vmul.f32 %v692_v37, %v303_v20  ;;  %v955_v16 = vpop.permute.xlu0 %954 }
 0x262   :  { %v764_v49 = vrot.slane %v763_v41, 1  ;;  %v601_v52 = vrot.slane %v600_v45, 1  ;;  %v956_v37 = vadd.s32 %v955_v16, %v952_v18 }
 0x263   :  { %v697_v51 = vadd.f32 %v1149_v13, %v696_v42  ;;  %v766_v10 = vsel %vm203_vm3, %v728_v29, 0.0  ;;  %v1159_v42 = vmov 32.0  }
 0x264   :  { %v765_v14 = vadd.f32 %v764_v49, %v763_v41  ;;  %v767_v58 = vrot.slane %v766_v10, 4  ;;  %v602_v35 = vadd.f32 %v601_v52, %v600_v45  ;;  %vm957_vm10 = vcmp.eq.s32.totalorder %v1293_v46, %v956_v37 }
 0x265   :  { %v701_v56 = vsel %vm700_vm15, %v1149_v13, %v697_v51  ;;  %v1097_v6 = vsel %vm957_vm10, 1.0, %v1157_v48 }
 0x266   :  { %v706_v59 = vsel %vm703_vm0, %v705_v55, %v701_v56  ;;  %v803_v57 = vsel %vm802_vm14, %v765_v14, %v801_v22  ;;  %1150 = vrcp.f32 %v602_v35  ;;  %v768_v44 = vadd.f32 %v767_v58, %v766_v10 }
 0x267   :  { %v707_v62 = vmul.f32 %v1563_v21, %v706_v59  ;;  %v717_v9 = vand.u32 2147483647, %v602_v35  ;;  %v719_v2 = vand.u32 2147483648, %v602_v35  ;;  %vm713_vm4 = vweird.f32 %v602_v35 }
 0x268   :  { %v769_v0 = vrot.slane %v768_v44, 2  ;;  %1152 = vrcp.f32 %v1159_v42  ;;  %vm1010_vm0 = vcmask 1041408  }
 0x269   :  { %v729_v63 = vmul.f32 %v707_v62, %v306_v60  ;;  %v720_v61 = vor.u32 1.1754944e-38, %v719_v2  ;;  %vm718_vm7 = vcmp.eq.f32.partialorder %v717_v9, 8.507059e+37  ;;  %v945_v2 = vpop.f32.mrf.mxu3 }
 0x26a   :  { %v770_v1 = vadd.f32 %v769_v0, %v768_v44 }
 0x26b   :  { %v773_v19 = vsel %vm203_vm3, %v729_v63, 0.0 }
 0x26c   :  { %v774_v38 = vrot.slane %v773_v19, 4  ;;  %v1151_v3 = vpop.eup %1150  ;;  %v771_v5 = vrot.slane %v770_v1, 1 }
 0x26d   :  { %v709_v4 = vmul.f32 %v1151_v3, %v602_v35  ;;  %vm714_vm2 = vweird.f32 %v1151_v3 }
 0x26e   :  { %v775_v7 = vadd.f32 %v774_v38, %v773_v19  ;;  %v772_v47 = vadd.f32 %v771_v5, %v770_v1  ;;  %vm715_vm5 = vmor %vm713_vm4, %vm714_vm2  ;;  %v1153_v43 = vpop.eup %1152  ;;  %v1114_v19 = vld [vmem:[%s1628_s1 + $0x4] ss:$0 sm:$0xff]  ;;  %vm1031_vm2 = vcmask 850944  }
 0x26f   :  { %v710_v36 = vsub.f32 1.0, %v709_v4  ;;  %v837_v45 = vmul.f32 32.0, %v1153_v43  ;;  %vm841_vm12 = vweird.f32 %v1153_v43 }
 0x270   :  { %v776_v8 = vrot.slane %v775_v7, 2  ;;  %v805_v15 = vsel %vm804_vm1, %v772_v47, %v803_v57  ;;  %vm1028_vm1 = vcmask 785408  }
 0x271   :  { %v711_v50 = vmul.f32 %v1151_v3, %v710_v36  ;;  %v838_v29 = vsub.f32 1.0, %v837_v45 }
 0x272   :  { %v777_v21 = vadd.f32 %v776_v8, %v775_v7  ;;  %v1016_v8 = vpop.permute.xlu0 %1015 }
 0x273   :  { %v712_v24 = vadd.f32 %v1151_v3, %v711_v50  ;;  %v839_v46 = vmul.f32 %v1153_v43, %v838_v29 }
 0x274   :  { %v778_v25 = vrot.slane %v777_v21, 1 }
 0x275   :  { %v716_v26 = vsel %vm715_vm5, %v1151_v3, %v712_v24  ;;  %v840_v49 = vadd.f32 %v1153_v43, %v839_v46  ;;  %v1115_v3 = vld [vmem:[%s1628_s1 + $0x5] ss:$0 sm:$0xff] }
 0x276   :  { %v779_v54 = vadd.f32 %v778_v25, %v777_v21  ;;  %v721_v53 = vsel %vm718_vm7, %v720_v61, %v716_v26  ;;  %v948_v25 = vpop.f32.mrf.mxu3 }
 0x277   :  { %v722_v13 = vmul.f32 %v1581_v11, %v721_v53  ;;  %v842_v51 = vsel %vm841_vm12, %v1153_v43, %v840_v49  ;;  %v1027_v61 = vsel %vm124_vm8, %v948_v25, %v1016_v8 }
 0x278   :  { %v807_v28 = vsel %vm806_vm6, %v779_v54, %v805_v15 }
 0x279   :  { %v730_v30 = vmul.f32 %v722_v13, %v309_v27 }
 0x27b   :  { %v780_v22 = vsel %vm203_vm3, %v730_v30, 0.0 }
 0x27c   :  { %v781_v31 = vrot.slane %v780_v22, 4 }
 0x27e   :  { %v782_v32 = vadd.f32 %v781_v31, %v780_v22 }
 0x280   :  { %v783_v33 = vrot.slane %v782_v32, 2 }
 0x282   :  { %v784_v34 = vadd.f32 %v783_v33, %v782_v32 }
 0x284   :  { %v785_v40 = vrot.slane %v784_v34, 1 }
 0x286   :  { %v786_v17 = vadd.f32 %v785_v40, %v784_v34 }
 0x288   :  { %v809_v20 = vsel %vm808_vm9, %v786_v17, %v807_v28 }
 0x289   :  { %1084 = vmatmul.msk.f32.vlgmr.msrb.gmra.mxu1 %vm203_vm3, %v809_v20 }
 0x291   :  { %1098 = vmatmul.msk.f32.vlgmr.msra.gmra.mxu1 %vm960_vm11, %v1097_v6 }
 0x306   :  { %v829_v11 = vpop.f32.mrf.mxu1 }
 0x307   :  { %v830_v39 = vadd.f32 %v1113_v23, %v829_v11 }
 0x309   :  { %v832_v12 = vadd.f32 %v830_v39, %v830_v39 }
 0x30b   :  { %v833_v41 = vsel %vm203_vm3, %v832_v12, 0.0 }
 0x30c   :  { %834 = vadd.xlane.f32.xlu1 %v833_v41 }
 0x30e   :  { %v981_v7 = vpop.f32.mrf.mxu1 }
 0x37f   :  { %v835_v52 = vpop.xlane.xlu1 %834 }
 0x380   :  { %v843_v10 = vmul.f32 %v842_v51, %v835_v52 }
 0x382   :  { %v844_v55 = vsub.f32 %v832_v12, %v843_v10 }
 0x384   :  { %v845_v14 = vmul.f32 %v844_v55, %v844_v55 }
 0x386   :  { %v846_v58 = vsel %vm203_vm3, %v845_v14, 0.0 }
 0x387   :  { %847 = vadd.xlane.f32.xlu2 %v846_v58 }
 0x3fa   :  { %v848_v56 = vpop.xlane.xlu2 %847 }
 0x3fb   :  { %v849_v35 = vmul.f32 %v848_v56, %v842_v51 }
 0x3fd   :  { %v850_v59 = vadd.f32 1e-05, %v849_v35 }
 0x3ff   :  { %1154 = vrsqrt.f32 %v850_v59  ;;  %vm857_vm14 = vweird.f32 %v850_v59 }
 0x405   :  { %v1155_v57 = vpop.eup %1154 }
 0x406   :  { %v852_v60 = vmul.f32 %v1155_v57, %v850_v59  ;;  %vm858_vm13 = vweird.f32 %v1155_v57 }
 0x407   :  { %vm859_vm15 = vmor %vm857_vm14, %vm858_vm13 }
 0x408   :  { %v853_v62 = vmul.f32 %v1155_v57, %v852_v60 }
 0x40a   :  { %v854_v44 = vmul.f32 0.5, %v853_v62 }
 0x40c   :  { %v855_v63 = vsub.f32 1.5, %v854_v44 }
 0x40e   :  { %v856_v0 = vmul.f32 %v1155_v57, %v855_v63 }
 0x410   :  { %v860_v1 = vsel %vm859_vm15, %v1155_v57, %v856_v0 }
 0x411   :  { %v861_v38 = vmul.f32 %v860_v1, %v844_v55 }
 0x413   :  { %v863_v4 = vmul.f32 %v1114_v19, %v861_v38 }
 0x415   :  { %v865_v5 = vadd.f32 %v1115_v3, %v863_v4 }
 0x417   :  { %1013 = vrot.lane.b32.xlu0 %v865_v5, %s1158_s26  ;;  %1099 = vmatpush.xpose.msk.msrb.mxu1 %vm203_vm3, %v865_v5 }
 0x41a   :  { %1100 = vmatmul.msk.f32.vlgmr.msrb.gmra.mxu1 %vm203_vm3, %v981_v7 }
 0x489   :  { %v1014_v9 = vpop.permute.xlu0 %1013 }
 0x48a   :  { %v1026_v50 = vsel %vm124_vm8, %v945_v2, %v1014_v9 }
 0x497   :  { %v1007_v36 = vpop.f32.mrf.mxu1 }
 0x498   :  { %v1011_v47 = vsel %vm1010_vm0, %v1007_v36, 0.0 }
 0x499   :  { %1020 = vrot.lane.b32.xlu0 %v1011_v47, %s1160_s27 }
 0x4a1   :  { %1022 = vrot.lane.b32.xlu0 %v1157_v48, %s1160_s27 }
 0x50b   :  { %v1021_v21 = vpop.permute.xlu0 %1020 }
 0x50c   :  { %v1029_v15 = vsel %vm1028_vm1, %v1026_v50, %v1021_v21 }
 0x50d   :  { %v1032_v24 = vsel %vm1031_vm2, %v1029_v15, 0.0 }
 0x50e   :  { %1034 = vst [vmem:[%s1629_s4] sm:$0xff] %v1032_v24 }
 0x513   :  { %v1023_v26 = vpop.permute.xlu0 %1022 }
 0x514   :  { %v1030_v54 = vsel %vm1028_vm1, %v1027_v61, %v1023_v26 }
 0x515   :  { %v1033_v48 = vsel %vm1031_vm2, %v1030_v54, 0.0 }
 0x516   :  { %1035 = vst [vmem:[%s1629_s4 + $0x8] sm:$0xff] %v1033_v48 }

</bundles_post_ra>
